<compile_context>
chip_gen: v5e
topology: v5e:2x2
jax: 0.10.0
libtpu: 0.0.40
codegen_flags: <defaults>
</compile_context>

<pallas_src>
import functools

import jax
import jax.numpy as jnp
from jax import lax
from jax.experimental import pallas as pl
from jax.experimental.pallas import tpu as pltpu

PAD = 7                                  # max dilation -> shared halo width
OFFSETS = (-7, -5, -3, 0, 3, 5, 7)       # taps of the fused 7-tap conv
NUM_TAPS = len(OFFSETS)


# --------------------------------------------------------------------------
# Shared per-tile compute: slab (C, tl + 2*PAD) -> sigmoid attention (C, tl)
# --------------------------------------------------------------------------
def _tile_compute(slab, w, bias, tl, *, im2col, mxu_dtype):
    C = w.shape[0]
    if slab.dtype != mxu_dtype:
        slab = slab.astype(mxu_dtype)
    if w.dtype != mxu_dtype:
        w = w.astype(mxu_dtype)
    if im2col:
        # Small-C path: stack the 7 shifted windows so the single matmul has
        # contraction dim 7C (better MXU K-fill when C is tiny).
        cols = jnp.concatenate(
            [slab[:, PAD + off: PAD + off + tl] for off in OFFSETS], axis=0)
        acc = jnp.dot(w, cols, preferred_element_type=jnp.float32)
        acc = acc + bias
    else:
        # Large-C path: 7 accumulated per-tap dots -- no materialized im2col
        # slab; the bias is folded into the accumulator init so there is no
        # separate epilogue add/broadcast.
        acc = jnp.broadcast_to(bias, (C, tl)).astype(jnp.float32)
        for k, off in enumerate(OFFSETS):
            acc = acc + jnp.dot(w[:, k * C:(k + 1) * C],
                                slab[:, PAD + off: PAD + off + tl],
                                preferred_element_type=jnp.float32)
    return jax.nn.sigmoid(acc)


# --------------------------------------------------------------------------
# Kernel A (NT == 1): whole halo'd row is one auto-pipelined VMEM block.
# --------------------------------------------------------------------------
def _rfb_c_kernel_resident(x_ref, w_ref, b_ref, o_ref, *, im2col, mxu_dtype):
    tl = o_ref.shape[2]
    o_ref[0] = _tile_compute(
        x_ref[0], w_ref[...], b_ref[...], tl,
        im2col=im2col, mxu_dtype=mxu_dtype).astype(o_ref.dtype)


# --------------------------------------------------------------------------
# Kernel B (NT > 1): manual double-buffered halo'd slab DMA from HBM.
# --------------------------------------------------------------------------
def _rfb_c_kernel_tiled(x_hbm, w_ref, b_ref, o_ref, xslab, sem,
                        *, im2col, mxu_dtype):
    b = pl.program_id(0)
    j = pl.program_id(1)
    nt = pl.num_programs(1)
    tl = o_ref.shape[2]
    slab_len = tl + 2 * PAD
    slot = j % 2

    def issue(start, sl):
        pltpu.make_async_copy(
            x_hbm.at[b, :, pl.ds(start, slab_len)], xslab.at[sl], sem.at[sl]
        ).start()

    # Prime the pipeline at the first L-tile of each batch row (all cross-step
    # prefetch stays within one batch row, so megacore-splitting "b" is safe
    # and every started DMA is waited on before the kernel ends).
    @pl.when(j == 0)
    def _():
        issue(0, 0)

    # Wait for this step's slab (issued just above, or prefetched by step j-1).
    pltpu.make_async_copy(
        x_hbm.at[b, :, pl.ds(0, slab_len)], xslab.at[slot], sem.at[slot]
    ).wait()

    # Prefetch the next L-tile of this row before computing on the current one.
    @pl.when(j + 1 < nt)
    def _():
        issue(pl.multiple_of((j + 1) * tl, 128), 1 - slot)

    o_ref[0] = _tile_compute(
        xslab[slot], w_ref[...], b_ref[...], tl,
        im2col=im2col, mxu_dtype=mxu_dtype).astype(o_ref.dtype)


# --------------------------------------------------------------------------
# Host-side helpers
# --------------------------------------------------------------------------
def fuse_rfb_c_params(params):
    """Fold branch convs + concat + 1x1 fuse conv into (C, 7C) weight + bias."""
    (w1, b1), (w2, b2), (w3, b3), (w4, b4), (wc, bc) = params
    C = w1.shape[0]
    wc_m = wc[:, :, 0]                                       # (C, 4C)
    wc1, wc2, wc3, wc4 = (wc_m[:, i * C:(i + 1) * C] for i in range(4))
    tap = {
        0: (wc1 @ w1[:, :, 0] + wc2 @ w2[:, :, 1]
            + wc3 @ w3[:, :, 1] + wc4 @ w4[:, :, 1]),
        -3: wc2 @ w2[:, :, 0], 3: wc2 @ w2[:, :, 2],
        -5: wc3 @ w3[:, :, 0], 5: wc3 @ w3[:, :, 2],
        -7: wc4 @ w4[:, :, 0], 7: wc4 @ w4[:, :, 2],
    }
    w_fused = jnp.concatenate([tap[o] for o in OFFSETS], axis=1)   # (C, 7C)
    b_fused = (wc_m @ jnp.concatenate([b1, b2, b3, b4]) + bc).reshape(C, 1)
    return w_fused.astype(jnp.float32), b_fused.astype(jnp.float32)


def _vmem_capacity_bytes():
    try:
        return int(pltpu.get_tpu_info().vmem_capacity_bytes)
    except Exception:
        return 64 * 1024 * 1024            # conservative default (v7x per-TC)


def _choose_tile_l(C, L, im2col, tile_l=None):
    """Lane-dense L tile: multiple of 128, budget derived from the chip's VMEM."""
    l128 = max(128, ((L + 127) // 128) * 128)
    if tile_l is not None:
        return min(max(128, ((tile_l + 127) // 128) * 128), l128)
    cap = _vmem_capacity_bytes()
    budget = min(cap // 4, 32 * 1024 * 1024)     # ~32 MiB v5e/v6e, ~16 MiB v7x
    # f32 bytes resident per L element per step:
    #   slab (2x buffered) + output (2x buffered) + accumulator
    #   + the im2col column slab if the small-C fused-K path is used.
    per_elem = (2 * C + 2 * C + C + (NUM_TAPS * C if im2col else 0)) * 4
    max_tl = max(128, (budget // per_elem) // 128 * 128)
    return min(l128, max_tl)


def rfb_c_forward(x, params, *, im2col=None, mxu_dtype=jnp.float32, tile_l=None):
    """x: (B, C, 1, L) float32 -- same layout PyTorch RFB_C.forward receives.

    im2col:    None -> auto (fused-K matmul when C < 64, per-tap dots otherwise)
    mxu_dtype: jnp.float32 (exact) or jnp.bfloat16 (v6e/v7x fast MXU path)
    tile_l:    optional L-tile override (testing / tuning)
    """
    B, C, one, L = x.shape
    assert one == 1
    x2 = x[:, :, 0, :]                                       # squeeze(dim=2)

    w_fused, b_fused = fuse_rfb_c_params(params)
    if mxu_dtype != jnp.float32:
        w_fused = w_fused.astype(mxu_dtype)                  # cast tiny weight on host
    if im2col is None:
        im2col = C < 64

    TL = _choose_tile_l(C, L, im2col, tile_l)
    NT = -(-L // TL)
    L_round = NT * TL
    # Zero pad: PAD halo each side + round-up zeros on the right.  The extra
    # zeros only feed output positions >= L, which are sliced away below.
    xp = jnp.pad(x2, ((0, 0), (0, 0), (PAD, PAD + (L_round - L))))

    cap = _vmem_capacity_bytes()
    cparams = dict(vmem_limit_bytes=int(min(cap // 2, 96 * 1024 * 1024)))
    w_spec = pl.BlockSpec((C, NUM_TAPS * C), lambda b, j: (0, 0))
    b_spec = pl.BlockSpec((C, 1), lambda b, j: (0, 0))
    o_spec = pl.BlockSpec((1, C, TL), lambda b, j: (b, 0, j))
    out_shape = jax.ShapeDtypeStruct((B, C, L_round), jnp.float32)
    kern_kwargs = dict(im2col=im2col, mxu_dtype=mxu_dtype)

    if NT == 1:
        # Whole halo'd row fits in one tile: let Pallas auto-pipeline the input
        # across the batch axis (copies hidden behind the previous batch's
        # compute); both grid axes stay megacore-parallel.
        out = pl.pallas_call(
            functools.partial(_rfb_c_kernel_resident, **kern_kwargs),
            out_shape=out_shape,
            grid_spec=pltpu.PrefetchScalarGridSpec(
                num_scalar_prefetch=0,
                grid=(B, NT),
                in_specs=[
                    pl.BlockSpec((1, C, L_round + 2 * PAD), lambda b, j: (b, 0, 0)),
                    w_spec, b_spec],
                out_specs=o_spec),
            compiler_params=pltpu.CompilerParams(
                dimension_semantics=("parallel", "parallel"), **cparams),
        )(xp, w_fused, b_fused)
    else:
        # Long-L path: stream overlapping halo'd slabs out of HBM with a manual
        # 2-deep double buffer; tile j+1 is prefetched while tile j computes.
        out = pl.pallas_call(
            functools.partial(_rfb_c_kernel_tiled, **kern_kwargs),
            out_shape=out_shape,
            grid_spec=pltpu.PrefetchScalarGridSpec(
                num_scalar_prefetch=0,
                grid=(B, NT),
                in_specs=[pl.BlockSpec(memory_space=pl.ANY), w_spec, b_spec],
                out_specs=o_spec,
                scratch_shapes=[
                    pltpu.VMEM((2, C, TL + 2 * PAD), jnp.float32),
                    pltpu.SemaphoreType.DMA((2,)),
                ]),
            compiler_params=pltpu.CompilerParams(
                dimension_semantics=("parallel", "arbitrary"), **cparams),
        )(xp, w_fused, b_fused)

    return out[:, :, :L][:, :, None, :]                      # unsqueeze(dim=2)


# ---------------- reference (plain JAX/XLA) for correctness check -----------
def conv1d_ref(x, w, b, padding, dilation):
    out = lax.conv_general_dilated(
        x, w, window_strides=(1,), padding=[(padding, padding)],
        rhs_dilation=(dilation,),
        dimension_numbers=("NCH", "OIH", "NCH"))
    return out + b[None, :, None]


def rfb_c_ref(x, params):
    (w1, b1), (w2, b2), (w3, b3), (w4, b4), (wc, bc) = params
    x2 = x[:, :, 0, :]
    r1 = conv1d_ref(x2, w1, b1, 0, 1)
    r2 = conv1d_ref(x2, w2, b2, 3, 3)
    r3 = conv1d_ref(x2, w3, b3, 5, 5)
    r4 = conv1d_ref(x2, w4, b4, 7, 7)
    cat = jnp.concatenate([r1, r2, r3, r4], axis=1)
    att = jax.nn.sigmoid(conv1d_ref(cat, wc, bc, 0, 1))
    return att[:, :, None, :]


if __name__ == "__main__":
    def init(k, shape):
        return jax.random.normal(k, shape, jnp.float32) * 0.1

    def make_params(key, C):
        ks = jax.random.split(key, 10)
        w1 = init(ks[0], (C, C, 1)); b1 = init(ks[1], (C,))
        w2 = init(ks[2], (C, C, 3)); b2 = init(ks[3], (C,))
        w3 = init(ks[4], (C, C, 3)); b3 = init(ks[5], (C,))
        w4 = init(ks[6], (C, C, 3)); b4 = init(ks[7], (C,))
        wc = init(ks[8], (C, 4 * C, 1)); bc = init(ks[9], (C,))
        return ((w1, b1), (w2, b2), (w3, b3), (w4, b4), (wc, bc))

    key = jax.random.PRNGKey(0)
    k_x1, k_p1, k_x2, k_p2 = jax.random.split(key, 4)

    # Config 1: module-typical small shape -> single-tile auto-pipelined path,
    # small-C fused-K (im2col) matmul.
    B, C, L = 2, 4, 16
    x = jax.random.normal(k_x1, (B, C, 1, L), jnp.float32)
    params = make_params(k_p1, C)
    out = jax.block_until_ready(rfb_c_forward(x, params))
    ref = rfb_c_ref(x, params)
    assert out.shape == (B, C, 1, L), out.shape
    assert jnp.allclose(out, ref, atol=1e-5, rtol=1e-5), \
        float(jnp.max(jnp.abs(out - ref)))

    # Config 2: exercise the per-tap accumulated-dot path and the multi-tile
    # double-buffered DMA path (tile_l=128 -> 3 L-tiles).
    B2, C2, L2 = 2, 8, 300
    x2 = jax.random.normal(k_x2, (B2, C2, 1, L2), jnp.float32)
    params2 = make_params(k_p2, C2)
    out2 = jax.block_until_ready(
        rfb_c_forward(x2, params2, im2col=False, tile_l=128))
    ref2 = rfb_c_ref(x2, params2)
    assert out2.shape == (B2, C2, 1, L2), out2.shape
    assert jnp.allclose(out2, ref2, atol=1e-5, rtol=1e-5), \
        float(jnp.max(jnp.abs(out2 - ref2)))

    # Config 3: bf16 MXU fast path (v6e/v7x), looser tolerance.
    out3 = jax.block_until_ready(
        rfb_c_forward(x, params, mxu_dtype=jnp.bfloat16))
    assert jnp.allclose(out3, ref, atol=1e-2), \
        float(jnp.max(jnp.abs(out3 - ref)))

    print("KERNEL_OK")
</pallas_src>

<mosaic_0001>
module attributes {stable_mosaic.version = 11 : i64} {
  func.func @_rfb_c_kernel_resident(%arg0: i32, %arg1: i32, %arg2: memref<1x4x142xf32, #tpu.memory_space<vmem>>, %arg3: memref<4x28xf32, #tpu.memory_space<vmem>>, %arg4: memref<4x1xf32, #tpu.memory_space<vmem>>, %arg5: memref<1x4x128xf32, #tpu.memory_space<vmem>>) attributes {dimension_semantics = [#tpu.dimension_semantics<parallel>, #tpu.dimension_semantics<parallel>], iteration_bounds = array<i64: 2, 1>, scalar_prefetch = 0 : i64, scratch_operands = 0 : i64, tpu.core_type = #tpu.core_type<tc>, window_params = [{transform_indices = @transform_0, window_bounds = array<i64: 1, 4, 142>}, {pipeline_mode = #tpu.pipeline_mode<synchronous>, transform_indices = @transform_1, window_bounds = array<i64: 4, 28>}, {pipeline_mode = #tpu.pipeline_mode<synchronous>, transform_indices = @transform_2, window_bounds = array<i64: 4, 1>}, {transform_indices = @transform_3, window_bounds = array<i64: 1, 4, 128>}]} {
    %c0 = arith.constant 0 : index
    %c0_0 = arith.constant 0 : index
    %c0_1 = arith.constant 0 : index
    %0 = vector.load %arg2[%c0, %c0_0, %c0_1] : memref<1x4x142xf32, #tpu.memory_space<vmem>>, vector<1x4x142xf32>
    %1 = vector.shape_cast %0 : vector<1x4x142xf32> to vector<4x142xf32>
    %c0_2 = arith.constant 0 : index
    %c0_3 = arith.constant 0 : index
    %2 = vector.load %arg3[%c0_2, %c0_3] : memref<4x28xf32, #tpu.memory_space<vmem>>, vector<4x28xf32>
    %c0_4 = arith.constant 0 : index
    %c0_5 = arith.constant 0 : index
    %3 = vector.load %arg4[%c0_4, %c0_5] : memref<4x1xf32, #tpu.memory_space<vmem>>, vector<4x1xf32>
    %4 = vector.extract_strided_slice %1 {offsets = [0, 0], sizes = [4, 128], strides = [1, 1]} : vector<4x142xf32> to vector<4x128xf32>
    %5 = vector.extract_strided_slice %1 {offsets = [0, 2], sizes = [4, 128], strides = [1, 1]} : vector<4x142xf32> to vector<4x128xf32>
    %6 = vector.extract_strided_slice %1 {offsets = [0, 4], sizes = [4, 128], strides = [1, 1]} : vector<4x142xf32> to vector<4x128xf32>
    %7 = vector.extract_strided_slice %1 {offsets = [0, 7], sizes = [4, 128], strides = [1, 1]} : vector<4x142xf32> to vector<4x128xf32>
    %8 = vector.extract_strided_slice %1 {offsets = [0, 10], sizes = [4, 128], strides = [1, 1]} : vector<4x142xf32> to vector<4x128xf32>
    %9 = vector.extract_strided_slice %1 {offsets = [0, 12], sizes = [4, 128], strides = [1, 1]} : vector<4x142xf32> to vector<4x128xf32>
    %10 = vector.extract_strided_slice %1 {offsets = [0, 14], sizes = [4, 128], strides = [1, 1]} : vector<4x142xf32> to vector<4x128xf32>
    %11 = tpu.concatenate %4, %5, %6, %7, %8, %9, %10 in 0 : vector<4x128xf32>, vector<4x128xf32>, vector<4x128xf32>, vector<4x128xf32>, vector<4x128xf32>, vector<4x128xf32>, vector<4x128xf32> -> vector<28x128xf32>
    %cst = arith.constant dense<0.000000e+00> : vector<4x128xf32>
    %12 = tpu.matmul %2, %11, %cst {dimension_numbers = #tpu.dot_dimension_numbers<[1], [0], [0], [1], [0, 0, 1, 1], [], []>} : vector<4x28xf32>, vector<28x128xf32>, vector<4x128xf32> -> vector<4x128xf32>
    %13 = vector.broadcast %3 : vector<4x1xf32> to vector<4x128xf32>
    %14 = arith.addf %12, %13 : vector<4x128xf32>
    %15 = arith.negf %14 : vector<4x128xf32>
    %16 = math.exp %15 : vector<4x128xf32>
    %cst_6 = arith.constant 1.000000e+00 : f32
    %17 = vector.broadcast %cst_6 : f32 to vector<4x128xf32>
    %18 = arith.addf %17, %16 : vector<4x128xf32>
    %19 = arith.divf %17, %18 : vector<4x128xf32>
    %c0_7 = arith.constant 0 : index
    %c0_8 = arith.constant 0 : index
    %c0_9 = arith.constant 0 : index
    %20 = vector.load %arg5[%c0_7, %c0_8, %c0_9] : memref<1x4x128xf32, #tpu.memory_space<vmem>>, vector<1x4x128xf32>
    %21 = vector.shape_cast %20 : vector<1x4x128xf32> to vector<4x128xf32>
    %22 = vector.shape_cast %19 : vector<4x128xf32> to vector<1x4x128xf32>
    tpu.vector_store %arg5[%c0_7, %c0_8, %c0_9], %22 {strides = array<i32>} : memref<1x4x128xf32, #tpu.memory_space<vmem>>, vector<1x4x128xf32>,
    return
  }
  func.func @transform_0(%arg0: i32, %arg1: i32) -> (i32, i32, i32) {
    %c0_i32 = arith.constant 0 : i32
    %c0_i32_0 = arith.constant 0 : i32
    %c0_i32_1 = arith.constant 0 : i32
    return %arg0, %c0_i32, %c0_i32_0 : i32, i32, i32
  }
  func.func @transform_1(%arg0: i32, %arg1: i32) -> (i32, i32) {
    %c0_i32 = arith.constant 0 : i32
    %c0_i32_0 = arith.constant 0 : i32
    %c0_i32_1 = arith.constant 0 : i32
    return %c0_i32, %c0_i32_0 : i32, i32
  }
  func.func @transform_2(%arg0: i32, %arg1: i32) -> (i32, i32) {
    %c0_i32 = arith.constant 0 : i32
    %c0_i32_0 = arith.constant 0 : i32
    %c0_i32_1 = arith.constant 0 : i32
    return %c0_i32, %c0_i32_0 : i32, i32
  }
  func.func @transform_3(%arg0: i32, %arg1: i32) -> (i32, i32, i32) {
    %c0_i32 = arith.constant 0 : i32
    %c0_i32_0 = arith.constant 0 : i32
    return %arg0, %c0_i32, %arg1 : i32, i32, i32
  }
}

</mosaic_0001>

<bundles_post_ra>
// kernel: tpu_custom_call.1
= control target key start
LH: loop header
LB: loop body
LE: loop exit
PB: predicated region body
PF: predicated region fallthrough
CT: control target
= control target key end

     0   :  { %8 = vsyncpa [#allocation3], 0  ;;  %s819_s0 = inlined_call_operand.hbm [shape: f32[2,4,142], index: 0, kind: input, shape index: {}]   ;;  %s820_s1 = inlined_call_operand.vmem [shape: f32[4,28], index: 1, kind: input, shape index: {}]   ;;  %s821_s2 = inlined_call_operand.vmem [shape: f32[4,1], index: 2, kind: input, shape index: {}]   ;;  %s822_s3 = inlined_call_operand.hbm [shape: f32[2,4,128], index: 3, kind: output, shape index: {}]  }
   0x1   :  { %10 = vsyncpa [#allocation3 + $0x1], 0 }
   0x2   :  { %11 = vsyncpa [#allocation4], 0 }
   0x3   :  { %13 = vsyncpa [#allocation4 + $0x1], 0  ;;  %s679_s12 = smov 0   ;;  %s681_s13 = smov 0  }
   0x4   :  { %s683_s14 = smov 0   ;;  %s685_s15 = smov 0  }
   0x5   :  { %s687_s16 = smov 0   ;;  %s689_s17 = smov 0  }
   0x6 LB: > { %s420_s18 = sadd.s32 4294967295, %s650_s17   ;;  %s421_s19 = sadd.s32 4294967294, %s650_s17   ;;  %s650_s17 = sphi %s689_s17, %s19_s17   ;;  %s646_s16 = sphi %s687_s16, %s831_s16   ;;  %s642_s15 = sphi %s685_s15, %s830_s15   ;;  %s638_s14 = sphi %s683_s14, %s829_s14   ;;  %s634_s13 = sphi %s681_s13, %s828_s13   ;;  %s630_s12 = sphi %s679_s12, %s827_s12  }
   0x7   : > { %s31_s20 = sadd.s32 1, %s646_s16  ;;  %s38_s21 = sadd.s32 1, %s638_s14 }
   0x8   : > { %p33_p0 = scmp.ge.s32.totalorder %s31_s20, 2  ;;  %p45_p1 = scmp.ne.s32.totalorder %s638_s14, %s634_s13 }
   0x9   : > { %p46_p2 = scmp.eq.s32.totalorder %s650_s17, 0  ;;  %p51_p3 = scmp.ne.s32.totalorder %s634_s13, %s630_s12 }
   0xa   : > { %s833_s20 = smov (%p33_p0, %s31_s20), 0  ;;  %p52_p5 = scmp.eq.s32.totalorder %s420_s18, 0 }
   0xb   : > { %p720_p4 = por %p46_p2, %p45_p1  ;;  %s35_s23 = ssub.s32 %s646_s16, %s833_s20 }
   0xc   : > { %p119_p6 = scmp.eq.s32.totalorder %s420_s18, 1  ;;  %p36_p7 = scmp.eq.s32.totalorder %s35_s23, 0 }
   0xd   : > { %p726_p8 = por %p52_p5, %p51_p3  ;;  %p125_p10 = scmp.eq.s32.totalorder %s421_s19, 1 }
   0xe   : > { %p730_p9 = por %p119_p6, %p45_p1  ;;  %p423_p12 = scmp.ge.s32.totalorder %s650_s17, 2 }
   0xf   : > { %s735_s26 = scalar_select %p36_p7, %s638_s14, %s38_s21  }
  0x10   : > { %p737_p11 = por %p125_p10, %p51_p3  ;;  %p450_p13 = scmp.lt.s32.totalorder %s650_s17, 2 }
  0x11   : > { %s151_s28 = sand.u32 1, %s638_s14   ;;  %s437_s30 = sshll.u32 %s646_s16, 3 }
  0x12   : > { %s424_s29 = sshll.u32 %s151_s28, 3  ;;  %s160_s6 = scalar_lea.hbm %s819_s0, %s437_s30 }
  0x13   : > { %s155_s7 = scalar_lea.vmem [#allocation2], %s424_s29  ;;  %s162_s9 = sshll.u32 %s160_s6, 4  ;;  %s163_s9 = int_to_ptr.hbm [resolvable:$true] %s162_s9 }
  0x14   : > { %s164_s8 = sshll.u32 %s155_s7, 4  ;;  %p443_p0 = pnand %p450_p13, %p720_p4  ;;  %s165_s8 = int_to_ptr.vmem [resolvable:$true] %s164_s8 }
  0x15   : > { %p427_p1 = scmp.ge.s32.totalorder %s650_s17, 1  ;;  %p169_p2 = scmp.lt.s32.totalorder %s650_s17, 3 }
  0x16   : > { %s152_s10 = scalar_lea.sflag [#allocation3], %s151_s28 }
  0x17   : > { %445 = dma.hbm_to_vmem [thread:$0]  (!%p443_p0), %s163_s9, 128, %s165_s8, %s152_s10  }
  0x18   : > { %p170_p3 = pnand %p427_p1, %p169_p2 }
  0x19   : > { %s753_s11 = sand.u32 (!%p170_p3), 1, %s634_s13  }
  0x1a   : > { %173 = sbr.rel (%p170_p3) target bundleno = 376 (0x178), region = 32  ;;  %s428_s18 = sshll.u32 (!%p170_p3), %s753_s11, 3 }
  0x1b   : > { %s176_s19 = scalar_lea.sflag (!%p170_p3), [#allocation3], %s753_s11  ;;  %s179_s21 = scalar_lea.vmem (!%p170_p3), [#allocation2], %s428_s18 }
  0x1f   : > { %621 = dma.done.wait (%p726_p8), %s176_s19, 128  }
  0x20   : > { %623 = vsyncadd (%p726_p8), %s176_s19, 4294967168  ;;  %v761_v0 = vld [vmem:[%s179_s21] sm:$0xff]  ;;  %s652_s22 = smov 118   ;;  %s653_s23 = smov 124   ;;  %v205_v18 = vld [vmem:[%s821_s2] sm:$0xf] }
  0x21   : > { %208 = vst [vmem:[#allocation1 + $0x1] ss:$2 sm:$0xff] %v761_v0  ;;  %s654_s24 = smov 116   ;;  %s655_s28 = smov 121   ;;  %v658_v20 = vmov 0   ;;  %vm246_vm0 = vcmask 965632  }
  0x22   : > { %s656_s29 = smov 114   ;;  %s657_s30 = smov 126   ;;  %532 = vset.pattern.permute.xlu1 %v658_v20  ;;  %533 = vset.pattern.permute.xlu0 %v658_v20  ;;  %vm257_vm1 = vcmask 949248   ;;  %vm267_vm2 = vcmask 932864   ;;  %vm225_vm3 = vcmask 1014784   ;;  %vm236_vm4 = vcmask 990208  }
  0x23   : > { %vm269_vm5 = vcmask 1043456   ;;  %vm215_vm6 = vcmask 1031168   ;;  %v204_v45 = vld [vmem:[%s820_s1] sm:$0xf]  ;;  %vm278_vm7 = vcmask 228352   ;;  %s429_s8 = sshll.u32 %s753_s11, 2 }
  0x24   : > { %s434_s9 = sshll.u32 %s642_s15, 2  ;;  %s202_s21 = scalar_lea.vmem [#allocation5], %s429_s8 }
  0x25   : > { %s336_s19 = scalar_lea.hbm %s822_s3, %s434_s9  ;;  %s325_s15 = scalar_lea.sflag [#allocation4], %s753_s11 }
  0x26   : > { %s588_s4 = scalar_lea.hbm %s822_s3, 8 }
  0x28   : > { %v209_v1 = vld.sshfl [vmem:[#allocation1] sm:$0xff pattern:$0x75316420]  ;;  %v210_v2 = vld.sshfl [vmem:[#allocation1 + $0x8] sm:$0xff pattern:$0x75316420] }
  0x29   : > { %218 = vst [vmem:[#allocation1] ss:$2 sm:$0xff] %v761_v0  ;;  %v527_v17 = vpack.i.bf16 %v210_v2, %v209_v1 }
  0x30   : > { %v219_v3 = vld.sshfl [vmem:[#allocation1] sm:$0xff pattern:$0x75316420]  ;;  %v220_v4 = vld.sshfl [vmem:[#allocation1 + $0x8] sm:$0xff pattern:$0x75316420] }
  0x31   : > { %229 = vst [vmem:[#allocation1 + $0x1] ss:$2 sm:$0xff] %v761_v0  ;;  %v517_v10 = vpack.i.bf16 %v220_v4, %v219_v3 }
  0x33   : > { %518 = vrot.lane.b32.xlu2 %v517_v10, %s653_s23  ;;  %s340_s23 = sshll.u32 %s336_s19, 4  ;;  %s341_s23 = int_to_ptr.hbm [resolvable:$true] %s340_s23 }
  0x38   : > { %v230_v5 = vld.sshfl [vmem:[#allocation1] sm:$0xff pattern:$0x75316420]  ;;  %v231_v6 = vld.sshfl [vmem:[#allocation1 + $0x8] sm:$0xff pattern:$0x75316420] }
  0x39   : > { %239 = vst [vmem:[#allocation1] ss:$2 sm:$0xff] %v761_v0  ;;  %v522_v11 = vpack.i.bf16 %v231_v6, %v230_v5 }
  0x3b   : > { %523 = vrot.lane.b32.xlu2 %v522_v11, %s655_s28 }
  0x40   : > { %v240_v7 = vld.sshfl [vmem:[#allocation1] sm:$0xff pattern:$0x75316420]  ;;  %v241_v8 = vld.sshfl [vmem:[#allocation1 + $0x8] sm:$0xff pattern:$0x75316420] }
  0x41   : > { %v507_v9 = vpack.i.bf16 %v241_v8, %v240_v7  ;;  %250 = vst [vmem:[#allocation1 + $0x1] ss:$2 sm:$0xff] %v761_v0 }
  0x43   : > { %508 = vrot.lane.b32.xlu1 %v507_v9, %s652_s22  ;;  %s338_s22 = sshll.u32 %s202_s21, 4  ;;  %s339_s22 = int_to_ptr.vmem [resolvable:$true] %s338_s22 }
  0x48   : > { %v251_v12 = vld.sshfl [vmem:[#allocation1] sm:$0xff pattern:$0x75316420]  ;;  %v252_v13 = vld.sshfl [vmem:[#allocation1 + $0x8] sm:$0xff pattern:$0x75316420] }
  0x49   : > { %260 = vst [vmem:[#allocation1] ss:$2 sm:$0xff] %v761_v0  ;;  %v512_v14 = vpack.i.bf16 %v252_v13, %v251_v12 }
  0x4b   : > { %513 = vrot.lane.b32.xlu1 %v512_v14, %s654_s24  ;;  %s582_s24 = sshra.s32 %s341_s23, 4  ;;  %s583_s24 = int_to_ptr.hbm [resolvable:$true] %s582_s24 }
  0x4c   : > { %s584_s28 = scalar_lea.hbm %s583_s24, 4  ;;  %p589_p7 = scmp.lt.s32.totalorder %s583_s24, %s822_s3 }
  0x4d   : > { %p585_p4 = scmp.ne.s32.totalorder %s583_s24, %s584_s28  ;;  %p590_p8 = scmp.lt.s32.totalorder %s588_s4, %s584_s28 }
  0x4f   : > { %p586_p5 = pnand %p585_p4, %p730_p9  ;;  %p591_p10 = por %p590_p8, %p589_p7 }
  0x50   : > { %v261_v15 = vld.sshfl [vmem:[#allocation1] sm:$0xff pattern:$0x75316420]  ;;  %v262_v16 = vld.sshfl [vmem:[#allocation1 + $0x8] sm:$0xff pattern:$0x75316420] }
  0x51   : > { %263 = vrot.lane.b32.xlu0 %v261_v15, %s656_s29  ;;  %p587_p6 = pneg %p586_p5 }
  0x53   : > { %275 = vperm.xlu1 %532, %v205_v18   ;;  %p592_p13 = pnand %p591_p10, %p587_p6 }
  0x59   : > { %265 = vrot.lane.b32.xlu0 %v262_v16, %s656_s29 }
  0x61   : > { %528 = vrot.lane.b32.xlu0 %v527_v17, %s657_s30 }
  0x8d   : > { %v519_v21 = vpop.permute.xlu2 %518 }
  0x8e   : > { %v521_v29 = vunpack.i.h.bf16 %v519_v21  ;;  %v520_v30 = vunpack.i.l.bf16 %v519_v21 }
  0x90   : > { %v226_v37 = vsel %vm225_vm3, %v520_v30, %v521_v29 }
  0x95   : > { %v524_v24 = vpop.permute.xlu2 %523 }
  0x96   : > { %v526_v31 = vunpack.i.h.bf16 %v524_v24  ;;  %v525_v32 = vunpack.i.l.bf16 %v524_v24 }
  0x98   : > { %v237_v38 = vsel %vm236_vm4, %v525_v32, %v526_v31 }
  0x99   : > { %v271_v40 = vsel %vm269_vm5, %v226_v37, %v237_v38 }
  0xb5   : > { %v509_v19 = vpop.permute.xlu1 %508 }
  0xb6   : > { %v511_v25 = vunpack.i.h.bf16 %v509_v19  ;;  %v510_v26 = vunpack.i.l.bf16 %v509_v19 }
  0xb8   : > { %v247_v34 = vsel %vm246_vm0, %v510_v26, %v511_v25 }
  0xbd   : > { %v514_v23 = vpop.permute.xlu1 %513 }
  0xbe   : > { %v516_v27 = vunpack.i.h.bf16 %v514_v23  ;;  %v515_v28 = vunpack.i.l.bf16 %v514_v23 }
  0xc0   : > { %v258_v35 = vsel %vm257_vm1, %v515_v28, %v516_v27 }
  0xc1   : > { %v272_v39 = vsel %vm269_vm5, %v247_v34, %v258_v35 }
  0xc3   : > { %v264_v22 = vpop.permute.xlu0 %263 }
  0xc5   : > { %v276_v47 = vpop.permute.xlu1 %275 }
  0xcb   : > { %v266_v33 = vpop.permute.xlu0 %265 }
  0xcc   : > { %v268_v36 = vsel %vm267_vm2, %v264_v22, %v266_v33 }
  0xcd   : > { %430 = vmatpush.msk.msra.mxu0 %vm269_vm5, %v268_v36 }
  0xcf   : > { %297 = vmatpush.msra.mxu0 %v272_v39 }
  0xd1   : > { %298 = vmatpush.msra.mxu0 %v271_v40 }
  0xd3   : > { %v529_v41 = vpop.permute.xlu0 %528 }
  0xd4   : > { %v531_v42 = vunpack.i.h.bf16 %v529_v41  ;;  %v530_v43 = vunpack.i.l.bf16 %v529_v41 }
  0xd6   : > { %v216_v44 = vsel %vm215_vm6, %v530_v43, %v531_v42 }
  0xd7   : > { %v270_v46 = vsel %vm269_vm5, %v761_v0, %v216_v44 }
  0xd8   : > { %299 = vmatpush.msra.mxu0 %v270_v46 }
  0xd9   : > { %431 = vmatmul.msk.f32.vlgmr.msra.gmra.mxu0 %vm278_vm7, %v204_v45 }
 0x156   : > { %v301_v48 = vpop.f32.mrf.mxu0 }
 0x157   : > { %v302_v49 = vadd.f32 %v301_v48, %v276_v47 }
 0x159   : > { %v432_v50 = vmul.f32 -1.442695, %v302_v49 }
 0x15b   : > { %534 = vpow2.f32 %v432_v50 }
 0x161   : > { %v535_v51 = vpop.eup %534 }
 0x162   : > { %v307_v52 = vadd.f32 1.0, %v535_v51 }
 0x164   : > { %536 = vrcp.f32 %v307_v52  ;;  %v319_v56 = vand.u32 2147483648, %v307_v52  ;;  %v317_v58 = vand.u32 2147483647, %v307_v52  ;;  %vm313_vm9 = vweird.f32 %v307_v52 }
 0x166   : > { %v320_v60 = vor.u32 1.1754944e-38, %v319_v56  ;;  %vm318_vm11 = vcmp.eq.f32.partialorder %v317_v58, 8.507059e+37 }
 0x16a   : > { %v537_v53 = vpop.eup %536 }
 0x16b   : > { %v309_v54 = vmul.f32 %v537_v53, %v307_v52  ;;  %vm314_vm8 = vweird.f32 %v537_v53 }
 0x16c   : > { %vm315_vm10 = vmor %vm313_vm9, %vm314_vm8 }
 0x16d   : > { %v310_v55 = vsub.f32 1.0, %v309_v54 }
 0x16f   : > { %v311_v57 = vmul.f32 %v537_v53, %v310_v55 }
 0x171   : > { %v312_v59 = vadd.f32 %v537_v53, %v311_v57 }
 0x173   : > { %v316_v61 = vsel %vm315_vm10, %v537_v53, %v312_v59 }
 0x174   : > { %v321_v62 = vsel %vm318_vm11, %v320_v60, %v316_v61 }
 0x175   : > { %323 = vst [vmem:[%s202_s21] sm:$0xf] %v321_v62 }
 0x176   : > { %595 = shalt.err (!%p592_p13)
}
 0x177   : > { %440 = dma.vmem_to_hbm [thread:$0]  (%p730_p9), %s339_s22, 64, %s341_s23, %s325_s15  }
 0x178 PF: > { %s352_s11 = sand.u32 1, %s630_s12   ;;  %p447_p0 = pnand %p423_p12, %p737_p11 }
 0x179   : > { %s353_s7 = scalar_lea.sflag [#allocation4], %s352_s11 }
 0x17a   : > { %p448_p1 = pneg %p447_p0 }
 0x17c   : > { %625 = dma.done.wait (%p448_p1), %s353_s7, 64  }
 0x17d   : > { %627 = vsyncadd (%p448_p1), %s353_s7, 4294967232  ;;  %s19_s17 = sadd.s32 1, %s650_s17   ;;  %s827_s12 = smov %s634_s13 }
 0x17e   : > { %p16_p2 = scmp.ge.s32.totalorder %s19_s17, 4   ;;  %s828_s13 = smov %s638_s14 }
 0x17f   : > { %s829_s14 = smov %s735_s26  ;;  %s830_s15 = smov %s646_s16 }
 0x180   : > { %s831_s16 = smov %s833_s20  ;;  %18 = sbr.rel (!%p16_p2) target bundleno = 6 (0x6), region = 80 }
 0x185   :  { %359 = vsyncpa [#allocation3], 1 }
 0x186   :  { %361 = vsyncpa [#allocation3 + $0x1], 1 }
 0x187   :  { %362 = vsyncpa [#allocation4], 1 }
 0x188   :  { %364 = vsyncpa [#allocation4 + $0x1], 1 }

</bundles_post_ra>
